<compile_context>
chip_gen: v7x
topology: tpu7x:2x2x1
jax: 0.10.0
libtpu: 0.0.40
codegen_flags: <defaults>
</compile_context>

<pallas_src>
import math

import jax
import jax.numpy as jnp
from jax.experimental import pallas as pl
from jax.experimental.pallas import tpu as pltpu

# Module hyper-parameters (z_dimension must be 1 per the PyTorch module assert).
SEQ_LEN = 8       # sequence_length
X_DIM = 1         # x_dimension
Z_DIM = 1         # z_dimension
INTER = 128       # inter_dim
BATCH = 2

MU_W = SEQ_LEN * X_DIM          # width of mean output      (8)
LV_W = SEQ_LEN                  # width of logvar output    (8)
MU_OFF = 0                      # mu      -> lanes [0, 8)
LV_OFF = MU_W                   # logvar  -> lanes [8, 16)
VAR_OFF = LV_OFF + LV_W         # var     -> lanes [16, 24)
OUT_LANES = 128                 # lane-dense output slab width
TM_CAP = 1024                   # big tiles amortize ~0.35 us per-grid-step overhead


def _round_up(x, m):
    return ((x + m - 1) // m) * m


def _mxu_is_128x128():
    """True on chips with a 128x128 MXU (v2-v5): split layer 2 into two dots."""
    try:
        kind = jax.devices()[0].device_kind.lower()
    except Exception:
        return False
    return any(t in kind for t in ("v2", "v3", "v4", "v5"))


def _gaussian_decoder_kernel(z_ref, w1_ref, w2_ref, w3_ref, b_ref, out_ref):
    """Fused DecoderMean + DecoderCovariance MLPs, one lane-dense output slab.

    z_ref:   (TM, L) f32        flattened latent sequences (pad rows are zero)
    w1_ref:  (L, 256) bf16      [wm1 | wc1]
    w2_ref:  bf16, either (256, 256) blkdiag(wm2, wc2)   [v6e/v7x fused path]
             or (256, 128) stacked [wm2; wc2]            [v5e split path]
    w3_ref:  (256, 128) bf16    wm3 -> lanes 0..7, wc3 -> lanes 8..15 and 16..23
    b_ref:   (8, 256) f32       row0=[bm1|bc1], row1=[bm2|bc2],
                                row2[:128]=packed b3, row3[:128]=var-lane mask
    out_ref: (TM, 128) f32      lanes 0..7 = mu, 8..15 = logvar, 16..23 = exp(logvar)
    """
    zb = z_ref[...].astype(jnp.bfloat16)            # cast in-kernel (VPU, tiny)
    b1 = b_ref[0:1, :]
    b2 = b_ref[1:2, :]
    b3 = b_ref[2:3, 0:OUT_LANES]
    var_mask = b_ref[3:4, 0:OUT_LANES]              # 1.0 on var lanes, else 0.0

    h1 = jnp.dot(zb, w1_ref[...], preferred_element_type=jnp.float32) + b1
    h1 = jnp.maximum(h1, 0.0).astype(jnp.bfloat16)                      # (TM, 256)

    if w2_ref.shape == (2 * INTER, 2 * INTER):
        # Fused block-diagonal layer 2: fills the 256x256 MXU on v6e/v7x.
        h2 = jnp.dot(h1, w2_ref[...], preferred_element_type=jnp.float32) + b2
        h2 = jnp.maximum(h2, 0.0).astype(jnp.bfloat16)                  # (TM, 256)
        s3 = jnp.dot(h2, w3_ref[...], preferred_element_type=jnp.float32) + b3
    else:
        # v5e/v4 split path: two 128-wide dots (128x128 MXU, half the W2 DMA).
        h2m = jnp.dot(h1[:, 0:INTER], w2_ref[0:INTER, :],
                      preferred_element_type=jnp.float32) + b2[:, 0:INTER]
        h2c = jnp.dot(h1[:, INTER:2 * INTER], w2_ref[INTER:2 * INTER, :],
                      preferred_element_type=jnp.float32) + b2[:, INTER:2 * INTER]
        h2m = jnp.maximum(h2m, 0.0).astype(jnp.bfloat16)
        h2c = jnp.maximum(h2c, 0.0).astype(jnp.bfloat16)
        s3 = (jnp.dot(h2m, w3_ref[0:INTER, :], preferred_element_type=jnp.float32)
              + jnp.dot(h2c, w3_ref[INTER:2 * INTER, :],
                        preferred_element_type=jnp.float32)
              + b3)

    # var = exp(logvar) on the duplicated lanes (EUP slot is otherwise idle).
    # NOTE: exp runs on all 128 lanes; any inf produced on the mu lanes is
    # discarded by the SELECT below. Do NOT rewrite this as mask*exp + (1-mask)*s3
    # (a multiply would turn inf into NaN).
    out_ref[...] = jnp.where(var_mask > 0.5, jnp.exp(s3), s3)


def _init_linear(key, fan_in, fan_out):
    """Deterministic PyTorch-style Linear init, weight stored as (in, out)."""
    kw, kb = jax.random.split(key)
    bound = 1.0 / math.sqrt(fan_in)
    w = jax.random.uniform(kw, (fan_in, fan_out), jnp.float32, -bound, bound)
    b = jax.random.uniform(kb, (1, fan_out), jnp.float32, -bound, bound)
    return w, b


def init_gaussian_decoder_params(key):
    keys = jax.random.split(key, 6)
    # DecoderMean mlp: (L*Z) -> INTER -> INTER -> (L*X)
    wm1, bm1 = _init_linear(keys[0], SEQ_LEN * Z_DIM, INTER)
    wm2, bm2 = _init_linear(keys[1], INTER, INTER)
    wm3, bm3 = _init_linear(keys[2], INTER, SEQ_LEN * X_DIM)
    # DecoderCovariance mlp: (L*Z) -> INTER -> INTER -> L
    wc1, bc1 = _init_linear(keys[3], SEQ_LEN * Z_DIM, INTER)
    wc2, bc2 = _init_linear(keys[4], INTER, INTER)
    wc3, bc3 = _init_linear(keys[5], INTER, SEQ_LEN)
    return (wm1, bm1, wm2, bm2, wm3, bm3, wc1, bc1, wc2, bc2, wc3, bc3)


def pack_gaussian_decoder_params(params, split_layer2=None):
    """Coalesce the 12 parameter arrays into 4 kernel inputs (weights in bf16)."""
    if split_layer2 is None:
        split_layer2 = _mxu_is_128x128()
    (wm1, bm1, wm2, bm2, wm3, bm3, wc1, bc1, wc2, bc2, wc3, bc3) = params

    w1p = jnp.concatenate([wm1, wc1], axis=1).astype(jnp.bfloat16)      # (L, 256)

    if split_layer2:
        # Two stacked 128x128 blocks -> two 128-wide dots on v5e's 128x128 MXU.
        w2p = jnp.concatenate([wm2, wc2], axis=0).astype(jnp.bfloat16)  # (256, 128)
    else:
        # Block-diagonal -> single 256-wide dot on the 256x256 MXU (v6e/v7x).
        w2p = jnp.zeros((2 * INTER, 2 * INTER), jnp.float32)
        w2p = w2p.at[:INTER, :INTER].set(wm2).at[INTER:, INTER:].set(wc2)
        w2p = w2p.astype(jnp.bfloat16)

    w3p = jnp.zeros((2 * INTER, OUT_LANES), jnp.float32)
    w3p = w3p.at[:INTER, MU_OFF:MU_OFF + MU_W].set(wm3)
    w3p = w3p.at[INTER:, LV_OFF:LV_OFF + LV_W].set(wc3)
    w3p = w3p.at[INTER:, VAR_OFF:VAR_OFF + LV_W].set(wc3)               # dup -> exp lanes
    w3p = w3p.astype(jnp.bfloat16)

    b3row = jnp.zeros((1, OUT_LANES), jnp.float32)
    b3row = b3row.at[:, MU_OFF:MU_OFF + MU_W].set(bm3)
    b3row = b3row.at[:, LV_OFF:LV_OFF + LV_W].set(bc3)
    b3row = b3row.at[:, VAR_OFF:VAR_OFF + LV_W].set(bc3)

    maskrow = jnp.zeros((1, OUT_LANES), jnp.float32)
    maskrow = maskrow.at[:, VAR_OFF:VAR_OFF + LV_W].set(1.0)            # var-lane mask

    bp = jnp.zeros((8, 2 * INTER), jnp.float32)
    bp = bp.at[0:1, :].set(jnp.concatenate([bm1, bc1], axis=1))
    bp = bp.at[1:2, :].set(jnp.concatenate([bm2, bc2], axis=1))
    bp = bp.at[2:3, 0:OUT_LANES].set(b3row)
    bp = bp.at[3:4, 0:OUT_LANES].set(maskrow)
    return w1p, w2p, w3p, bp


@jax.jit
def gaussian_decoder_forward(z, packed_params):
    """z: (B, L, Z_DIM) float32.  Returns (mu_x, logvar_x, cov_diag_embed).

    Jitted end-to-end so the pad / slices / reshapes / diag-embed fuse with the
    pallas_call instead of being standalone XLA launches (overhead-bound regime).
    """
    w1p, w2p, w3p, bp = packed_params
    b, seq_len, z_dim = z.shape
    assert z_dim == Z_DIM and seq_len == SEQ_LEN
    z_flat = z.reshape(b, seq_len * z_dim)                 # matches z.view(B, -1)

    # Tile the batch (M) dim: >= 2 grid steps once padded batch >= 16 so v7x's
    # second TensorCore gets work; TM capped at 1024 to amortize per-step cost.
    m0 = _round_up(max(b, 8), 8)
    if m0 <= 8:
        tm = 8
    else:
        tm = min(TM_CAP, _round_up((m0 + 1) // 2, 8))
    m_pad = _round_up(m0, tm)
    z_pad = jnp.pad(z_flat, ((0, m_pad - b), (0, 0)))      # fused by jit; no-op if exact

    grid_m = m_pad // tm
    w2_elems = w2p.shape[0] * w2p.shape[1]
    flops = 2 * m_pad * (seq_len * z_dim * 2 * INTER + w2_elems + 2 * INTER * OUT_LANES)
    bytes_accessed = (z_pad.size * 4 + w1p.size * 2 + w2p.size * 2 + w3p.size * 2
                      + bp.size * 4 + m_pad * OUT_LANES * 4)

    out = pl.pallas_call(
        _gaussian_decoder_kernel,
        out_shape=jax.ShapeDtypeStruct((m_pad, OUT_LANES), jnp.float32),
        grid=(grid_m,),
        in_specs=[
            pl.BlockSpec((tm, seq_len * z_dim), lambda i: (i, 0)),
            pl.BlockSpec(w1p.shape, lambda i: (0, 0)),
            pl.BlockSpec(w2p.shape, lambda i: (0, 0)),
            pl.BlockSpec(w3p.shape, lambda i: (0, 0)),
            pl.BlockSpec(bp.shape, lambda i: (0, 0)),
        ],
        out_specs=pl.BlockSpec((tm, OUT_LANES), lambda i: (i, 0)),
        compiler_params=pltpu.CompilerParams(
            dimension_semantics=("parallel",)),
        cost_estimate=pl.CostEstimate(
            flops=flops,
            transcendentals=m_pad * OUT_LANES,
            bytes_accessed=bytes_accessed),
    )(z_pad, w1p, w2p, w3p, bp)

    # ShapeManager.shape_out semantics for a 3-D input: view(B, L, -1)
    mu_x = out[:b, MU_OFF:MU_OFF + MU_W].reshape(b, seq_len, X_DIM)
    logvar_x = out[:b, LV_OFF:LV_OFF + LV_W].reshape(b, seq_len, -1)   # (B, L, 1)
    var_x = out[:b, VAR_OFF:VAR_OFF + LV_W].reshape(b, seq_len, -1)    # exp(logvar)

    # torch.diag_embed(exp(logvar)): diagonal covariance of the observation model.
    # TODO(synk): torch.distributions.MultivariateNormal has no Pallas equivalent;
    # we return its parameters (mean + diagonal covariance) instead.
    cov = var_x[..., None] * jnp.eye(var_x.shape[-1], dtype=var_x.dtype)  # (B, L, 1, 1)
    return mu_x, logvar_x, cov


def _reference_forward_f32(z, params):
    """Pure-JAX f32 reference (unfused, original parameterization)."""
    (wm1, bm1, wm2, bm2, wm3, bm3, wc1, bc1, wc2, bc2, wc3, bc3) = params
    b = z.shape[0]
    zf = z.reshape(b, -1)
    h = jnp.maximum(zf @ wm1 + bm1, 0.0)
    h = jnp.maximum(h @ wm2 + bm2, 0.0)
    mu = (h @ wm3 + bm3).reshape(b, SEQ_LEN, X_DIM)
    g = jnp.maximum(zf @ wc1 + bc1, 0.0)
    g = jnp.maximum(g @ wc2 + bc2, 0.0)
    lv = (g @ wc3 + bc3).reshape(b, SEQ_LEN, -1)
    return mu, lv


def _reference_forward_bf16(z, params):
    """Pure-JAX reference mirroring the kernel's bf16-weight / f32-accum numerics."""
    (wm1, bm1, wm2, bm2, wm3, bm3, wc1, bc1, wc2, bc2, wc3, bc3) = params
    c = lambda a: a.astype(jnp.bfloat16)
    f32 = jnp.float32
    b = z.shape[0]
    zf = c(z.reshape(b, -1))
    h = jnp.maximum(jnp.dot(zf, c(wm1), preferred_element_type=f32) + bm1, 0.0)
    h = jnp.maximum(jnp.dot(c(h), c(wm2), preferred_element_type=f32) + bm2, 0.0)
    mu = (jnp.dot(c(h), c(wm3), preferred_element_type=f32) + bm3
          ).reshape(b, SEQ_LEN, X_DIM)
    g = jnp.maximum(jnp.dot(zf, c(wc1), preferred_element_type=f32) + bc1, 0.0)
    g = jnp.maximum(jnp.dot(c(g), c(wc2), preferred_element_type=f32) + bc2, 0.0)
    lv = (jnp.dot(c(g), c(wc3), preferred_element_type=f32) + bc3
          ).reshape(b, SEQ_LEN, -1)
    return mu, lv


if __name__ == "__main__":
    key = jax.random.PRNGKey(0)
    kz, kp = jax.random.split(key)
    z = jax.random.normal(kz, (BATCH, SEQ_LEN, Z_DIM), dtype=jnp.float32)
    params = init_gaussian_decoder_params(kp)
    packed = pack_gaussian_decoder_params(params)

    mu_x, logvar_x, cov = gaussian_decoder_forward(z, packed)
    jax.block_until_ready((mu_x, logvar_x, cov))

    assert mu_x.shape == (BATCH, SEQ_LEN, X_DIM)
    assert logvar_x.shape == (BATCH, SEQ_LEN, 1)
    assert cov.shape == (BATCH, SEQ_LEN, 1, 1)

    # Exact-numerics check against a reference that mirrors the kernel's
    # bf16-weight / f32-accumulation arithmetic.
    mu_b, lv_b = _reference_forward_bf16(z, params)
    assert jnp.allclose(mu_x, mu_b, atol=2e-3, rtol=2e-3)
    assert jnp.allclose(logvar_x, lv_b, atol=2e-3, rtol=2e-3)
    assert jnp.allclose(cov[..., 0, 0], jnp.exp(lv_b[..., 0]), atol=2e-3, rtol=1e-2)

    # Loose sanity check against the full-f32 reference (bf16 weight quantization
    # bounds the deviation well inside these tolerances at this scale).
    mu_f, lv_f = _reference_forward_f32(z, params)
    assert jnp.allclose(mu_x, mu_f, atol=0.1, rtol=0.1)
    assert jnp.allclose(logvar_x, lv_f, atol=0.1, rtol=0.1)

    print("KERNEL_OK")
</pallas_src>

<mosaic_0001>
module attributes {stable_mosaic.version = 11 : i64} {
  func.func @_gaussian_decoder_kernel(%arg0: i32, %arg1: memref<8x8xf32, #tpu.memory_space<vmem>>, %arg2: memref<8x256xbf16, #tpu.memory_space<vmem>>, %arg3: memref<256x256xbf16, #tpu.memory_space<vmem>>, %arg4: memref<256x128xbf16, #tpu.memory_space<vmem>>, %arg5: memref<8x256xf32, #tpu.memory_space<vmem>>, %arg6: memref<8x128xf32, #tpu.memory_space<vmem>>) attributes {dimension_semantics = [#tpu.dimension_semantics<parallel>], iteration_bounds = array<i64: 1>, scalar_prefetch = 0 : i64, scratch_operands = 0 : i64, tpu.core_type = #tpu.core_type<tc>, window_params = [{transform_indices = @transform_0, window_bounds = array<i64: 8, 8>}, {pipeline_mode = #tpu.pipeline_mode<synchronous>, transform_indices = @transform_1, window_bounds = array<i64: 8, 256>}, {pipeline_mode = #tpu.pipeline_mode<synchronous>, transform_indices = @transform_2, window_bounds = array<i64: 256, 256>}, {pipeline_mode = #tpu.pipeline_mode<synchronous>, transform_indices = @transform_3, window_bounds = array<i64: 256, 128>}, {pipeline_mode = #tpu.pipeline_mode<synchronous>, transform_indices = @transform_4, window_bounds = array<i64: 8, 256>}, {transform_indices = @transform_5, window_bounds = array<i64: 8, 128>}]} {
    %c0 = arith.constant 0 : index
    %c0_0 = arith.constant 0 : index
    %0 = vector.load %arg1[%c0, %c0_0] : memref<8x8xf32, #tpu.memory_space<vmem>>, vector<8x8xf32>
    %1 = arith.truncf %0 : vector<8x8xf32> to vector<8x8xbf16>
    %c0_1 = arith.constant 0 : index
    %c0_2 = arith.constant 0 : index
    %2 = vector.load %arg5[%c0_1, %c0_2] : memref<8x256xf32, #tpu.memory_space<vmem>>, vector<1x256xf32>
    %c1 = arith.constant 1 : index
    %c0_3 = arith.constant 0 : index
    %3 = vector.load %arg5[%c1, %c0_3] : memref<8x256xf32, #tpu.memory_space<vmem>>, vector<1x256xf32>
    %c2 = arith.constant 2 : index
    %c0_4 = arith.constant 0 : index
    %4 = vector.load %arg5[%c2, %c0_4] : memref<8x256xf32, #tpu.memory_space<vmem>>, vector<1x128xf32>
    %c3 = arith.constant 3 : index
    %c0_5 = arith.constant 0 : index
    %5 = vector.load %arg5[%c3, %c0_5] : memref<8x256xf32, #tpu.memory_space<vmem>>, vector<1x128xf32>
    %c0_6 = arith.constant 0 : index
    %c0_7 = arith.constant 0 : index
    %6 = vector.load %arg2[%c0_6, %c0_7] : memref<8x256xbf16, #tpu.memory_space<vmem>>, vector<8x256xbf16>
    %cst = arith.constant dense<0.000000e+00> : vector<8x256xf32>
    %7 = tpu.matmul %1, %6, %cst {dimension_numbers = #tpu.dot_dimension_numbers<[1], [0], [0], [1], [0, 0, 1, 1], [], []>} : vector<8x8xbf16>, vector<8x256xbf16>, vector<8x256xf32> -> vector<8x256xf32>
    %8 = vector.broadcast %2 : vector<1x256xf32> to vector<8x256xf32>
    %9 = arith.addf %7, %8 : vector<8x256xf32>
    %cst_8 = arith.constant 0.000000e+00 : f32
    %10 = vector.broadcast %cst_8 : f32 to vector<8x256xf32>
    %11 = arith.maximumf %9, %10 : vector<8x256xf32>
    %12 = arith.truncf %11 : vector<8x256xf32> to vector<8x256xbf16>
    %c0_9 = arith.constant 0 : index
    %c0_10 = arith.constant 0 : index
    %13 = vector.load %arg3[%c0_9, %c0_10] : memref<256x256xbf16, #tpu.memory_space<vmem>>, vector<256x256xbf16>
    %cst_11 = arith.constant dense<0.000000e+00> : vector<8x256xf32>
    %14 = tpu.matmul %12, %13, %cst_11 {dimension_numbers = #tpu.dot_dimension_numbers<[1], [0], [0], [1], [0, 0, 1, 1], [], []>} : vector<8x256xbf16>, vector<256x256xbf16>, vector<8x256xf32> -> vector<8x256xf32>
    %15 = vector.broadcast %3 : vector<1x256xf32> to vector<8x256xf32>
    %16 = arith.addf %14, %15 : vector<8x256xf32>
    %cst_12 = arith.constant 0.000000e+00 : f32
    %17 = vector.broadcast %cst_12 : f32 to vector<8x256xf32>
    %18 = arith.maximumf %16, %17 : vector<8x256xf32>
    %19 = arith.truncf %18 : vector<8x256xf32> to vector<8x256xbf16>
    %c0_13 = arith.constant 0 : index
    %c0_14 = arith.constant 0 : index
    %20 = vector.load %arg4[%c0_13, %c0_14] : memref<256x128xbf16, #tpu.memory_space<vmem>>, vector<256x128xbf16>
    %cst_15 = arith.constant dense<0.000000e+00> : vector<8x128xf32>
    %21 = tpu.matmul %19, %20, %cst_15 {dimension_numbers = #tpu.dot_dimension_numbers<[1], [0], [0], [1], [0, 0, 1, 1], [], []>} : vector<8x256xbf16>, vector<256x128xbf16>, vector<8x128xf32> -> vector<8x128xf32>
    %22 = vector.broadcast %4 : vector<1x128xf32> to vector<8x128xf32>
    %23 = arith.addf %21, %22 : vector<8x128xf32>
    %cst_16 = arith.constant 5.000000e-01 : f32
    %24 = vector.broadcast %cst_16 : f32 to vector<1x128xf32>
    %25 = arith.cmpf ogt, %5, %24 : vector<1x128xf32>
    %26 = math.exp %23 : vector<8x128xf32>
    %27 = vector.shape_cast %25 : vector<1x128xi1> to vector<1x128xi1>
    %28 = vector.broadcast %27 : vector<1x128xi1> to vector<8x128xi1>
    %29 = arith.select %28, %26, %23 : vector<8x128xi1>, vector<8x128xf32>
    %c0_17 = arith.constant 0 : index
    %c0_18 = arith.constant 0 : index
    %30 = vector.load %arg6[%c0_17, %c0_18] : memref<8x128xf32, #tpu.memory_space<vmem>>, vector<8x128xf32>
    tpu.vector_store %arg6[%c0_17, %c0_18], %29 {strides = array<i32>} : memref<8x128xf32, #tpu.memory_space<vmem>>, vector<8x128xf32>,
    return
  }
  func.func @transform_0(%arg0: i32) -> (i32, i32) {
    %c0_i32 = arith.constant 0 : i32
    %c0_i32_0 = arith.constant 0 : i32
    return %arg0, %c0_i32 : i32, i32
  }
  func.func @transform_1(%arg0: i32) -> (i32, i32) {
    %c0_i32 = arith.constant 0 : i32
    %c0_i32_0 = arith.constant 0 : i32
    %c0_i32_1 = arith.constant 0 : i32
    return %c0_i32, %c0_i32_0 : i32, i32
  }
  func.func @transform_2(%arg0: i32) -> (i32, i32) {
    %c0_i32 = arith.constant 0 : i32
    %c0_i32_0 = arith.constant 0 : i32
    %c0_i32_1 = arith.constant 0 : i32
    return %c0_i32, %c0_i32_0 : i32, i32
  }
  func.func @transform_3(%arg0: i32) -> (i32, i32) {
    %c0_i32 = arith.constant 0 : i32
    %c0_i32_0 = arith.constant 0 : i32
    %c0_i32_1 = arith.constant 0 : i32
    return %c0_i32, %c0_i32_0 : i32, i32
  }
  func.func @transform_4(%arg0: i32) -> (i32, i32) {
    %c0_i32 = arith.constant 0 : i32
    %c0_i32_0 = arith.constant 0 : i32
    %c0_i32_1 = arith.constant 0 : i32
    return %c0_i32, %c0_i32_0 : i32, i32
  }
  func.func @transform_5(%arg0: i32) -> (i32, i32) {
    %c0_i32 = arith.constant 0 : i32
    %c0_i32_0 = arith.constant 0 : i32
    return %arg0, %c0_i32 : i32, i32
  }
}

</mosaic_0001>

<bundles_post_ra>
// kernel: gaussian_decoder_forward.1
= control target key start
LH: loop header
LB: loop body
LE: loop exit
PB: predicated region body
PF: predicated region fallthrough
CT: control target
= control target key end

     0   :  { %10 = vsyncpa [#allocation3], 0  ;;  %s838_s0 = inlined_call_operand.vmem [shape: f32[8,8], index: 0, kind: input, shape index: {}]   ;;  %s839_s1 = inlined_call_operand.vmem [shape: bf16[8,256], index: 1, kind: input, shape index: {}]   ;;  %s840_s2 = inlined_call_operand.hbm [shape: bf16[256,256], index: 2, kind: input, shape index: {}]   ;;  %s841_s3 = inlined_call_operand.hbm [shape: bf16[256,128], index: 3, kind: input, shape index: {}]   ;;  %s842_s4 = inlined_call_operand.vmem [shape: f32[8,256], index: 4, kind: input, shape index: {}]   ;;  %s843_s5 = inlined_call_operand.vmem [shape: f32[8,128], index: 5, kind: output, shape index: {}]  }
   0x1   :  { %11 = vsyncpa [#allocation5], 0  ;;  %s756_s18 = smov [#allocation2]   ;;  %s708_s22 = scalar_lea.hbm %s840_s2, 4096 }
   0x2   :  { %s21_s19 = sshll.u32 %s756_s18, 4  ;;  %p709_p0 = scmp.ne.s32.totalorder %s840_s2, %s708_s22  ;;  %s22_s19 = int_to_ptr.vmem [resolvable:$true] %s21_s19 }
   0x3   :  { %p712_p1 = scmp.lt.u32.totalorder %s708_s22, %s840_s2 }
   0x5   :  { %p714_p2 = pnand %p712_p1, %p709_p0 }
   0x7   :  { %717 = shalt.err (!%p714_p2)
}
   0x8   :  { %s718_s27 = scalar_lea.vmem %s22_s19, 4096  ;;  %p723_p4 = scmp.lt.s32.totalorder %s22_s19, %s22_s19 }
   0x9   :  { %p719_p3 = scmp.ne.s32.totalorder %s22_s19, %s718_s27  ;;  %p724_p5 = scmp.lt.s32.totalorder %s718_s27, %s718_s27 }
   0xb   :  { %p725_p6 = por %p724_p5, %p723_p4 }
   0xd   :  { %p726_p7 = pnand %p725_p6, %p719_p3 }
   0xf   :  { %729 = shalt.err (!%p726_p7)
}
  0x10   :  { %s757_s28 = smov 128   ;;  %s758_s29 = smov 8  }
  0x11   :  { %27 = dma.hbm_to_vmem [thread:$0]  %s840_s2, 4096, %s22_s19, [#allocation3], %s757_s28, %s757_s28, %s758_s29  }
  0x12   :  { %s759_s7 = smov [#allocation4]   ;;  %s730_s11 = scalar_lea.hbm %s841_s3, 2048 }
  0x13   :  { %s33_s8 = sshll.u32 %s759_s7, 4  ;;  %p731_p8 = scmp.ne.s32.totalorder %s841_s3, %s730_s11  ;;  %s34_s8 = int_to_ptr.vmem [resolvable:$true] %s33_s8 }
  0x14   :  { %p734_p9 = scmp.lt.u32.totalorder %s730_s11, %s841_s3 }
  0x16   :  { %p736_p10 = pnand %p734_p9, %p731_p8 }
  0x18   :  { %739 = shalt.err (!%p736_p10)
}
  0x19   :  { %s740_s16 = scalar_lea.vmem %s34_s8, 2048  ;;  %p745_p12 = scmp.lt.s32.totalorder %s34_s8, %s34_s8 }
  0x1a   :  { %p741_p11 = scmp.ne.s32.totalorder %s34_s8, %s740_s16  ;;  %p746_p13 = scmp.lt.s32.totalorder %s740_s16, %s740_s16 }
  0x1c   :  { %p747_p0 = por %p746_p13, %p745_p12 }
  0x1e   :  { %p748_p1 = pnand %p747_p0, %p741_p11 }
  0x20   :  { %751 = shalt.err (!%p748_p1)
}
  0x21   :  { %s760_s2 = smov 64   ;;  %s761_s17 = smov 4  }
  0x22   :  { %39 = dma.hbm_to_vmem [thread:$0]  %s841_s3, 2048, %s34_s8, [#allocation5], %s760_s2, %s760_s2, %s761_s17  }
  0x23   :  { %752 = dma.done.wait [#allocation3], 4096  }
  0x24   :  { %753 = vsyncadd [#allocation3], 4294963200 }
  0x25   :  { %754 = dma.done.wait [#allocation5], 2048  }
  0x26   :  { %755 = vsyncadd [#allocation5], 4294965248  ;;  %v762_v0 = vmov 0   ;;  %v56_v1 = vld [vmem:[%s839_s1] sm:$0xff]  ;;  %vm77_vm0 = vcmask 1043456   ;;  %vm73_vm1 = vcmask 64512   ;;  %v58_v51 = vlaneseq }
  0x27   :  { %116 = vmatprep.mubr.bf16.mxu0 %v762_v0  ;;  %v49_v2 = vld [vmem:[%s838_s0] sm:$0xff]  ;;  %v560_v3 = vcombine.high %v56_v1, %v56_v1  ;;  %v559_v4 = vcombine.low %v56_v1, %v56_v1  ;;  %v645_v7 = vld [vmem:[#allocation2 + $0x14] ss:$8 sps:$4 sm:$0xff]   ;;  %v647_v10 = vld [vmem:[#allocation2 + $0x10] ss:$8 sps:$4 sm:$0xff]  }
  0x28   :  { %v642_v5 = vld [vmem:[#allocation2 + $0x4] ss:$8 sps:$4 sm:$0xff]   ;;  %v644_v6 = vld [vmem:[#allocation2] ss:$8 sps:$4 sm:$0xff]   ;;  %v50_v9 = vpack.c.bf16 %v49_v2, %v49_v2  ;;  %v651_v13 = vld [vmem:[#allocation2 + $0x34] ss:$8 sps:$4 sm:$0xff]  }
  0x29   :  { %561 = vmatprep.subr.msk.bf16.mxu0 %vm77_vm0, %v560_v3  ;;  %v79_v8 = vsel %vm77_vm0, %v559_v4, 0  ;;  %332 = vmatprep.subr.bf16.mxu1 %v642_v5  ;;  %v648_v11 = vld [vmem:[#allocation2 + $0x24] ss:$8 sps:$4 sm:$0xff]   ;;  %v650_v12 = vld [vmem:[#allocation2 + $0x20] ss:$8 sps:$4 sm:$0xff]   ;;  %v694_v43 = vld [vmem:[#allocation4 + $0x50] sm:$0xff]  }
  0x2a   :  { %85 = vmatpush1.bf16.msra.mxu0 %v79_v8  ;;  %333 = vmatpush1.bf16.msra.mxu1 %v644_v6  ;;  %v653_v14 = vld [vmem:[#allocation2 + $0x30] ss:$8 sps:$4 sm:$0xff]   ;;  %v654_v15 = vld [vmem:[#allocation2 + $0x44] ss:$8 sps:$4 sm:$0xff]   ;;  %v656_v16 = vld [vmem:[#allocation2 + $0x40] ss:$8 sps:$4 sm:$0xff]  }
  0x2b   :  { %334 = vmatprep.subr.bf16.mxu1 %v645_v7  ;;  %v657_v17 = vld [vmem:[#allocation2 + $0x54] ss:$8 sps:$4 sm:$0xff]   ;;  %v659_v18 = vld [vmem:[#allocation2 + $0x50] ss:$8 sps:$4 sm:$0xff]   ;;  %v660_v19 = vld [vmem:[#allocation2 + $0x64] ss:$8 sps:$4 sm:$0xff]  }
  0x2c   :  { %v662_v20 = vld [vmem:[#allocation2 + $0x60] ss:$8 sps:$4 sm:$0xff]   ;;  %v663_v21 = vld [vmem:[#allocation2 + $0x74] ss:$8 sps:$4 sm:$0xff]   ;;  %v665_v22 = vld [vmem:[#allocation2 + $0x70] ss:$8 sps:$4 sm:$0xff]  }
  0x2d   :  { %562 = vmatmul.mubr.msk.bf16.vlgmr.msra.gmra.mrb[0].mxu0 %vm73_vm1, %v50_v9  ;;  %v666_v23 = vld [vmem:[#allocation2 + $0x84] ss:$8 sps:$4 sm:$0xff]   ;;  %v668_v24 = vld [vmem:[#allocation2 + $0x80] ss:$8 sps:$4 sm:$0xff]   ;;  %v669_v25 = vld [vmem:[#allocation2 + $0x94] ss:$8 sps:$4 sm:$0xff]  }
  0x2e   :  { %335 = vmatpush1.bf16.msra.mxu1 %v647_v10  ;;  %v671_v26 = vld [vmem:[#allocation2 + $0x90] ss:$8 sps:$4 sm:$0xff]   ;;  %v672_v27 = vld [vmem:[#allocation2 + $0xa4] ss:$8 sps:$4 sm:$0xff]   ;;  %v674_v28 = vld [vmem:[#allocation2 + $0xa0] ss:$8 sps:$4 sm:$0xff]  }
  0x2f   :  { %336 = vmatprep.subr.bf16.mxu1 %v648_v11  ;;  %v675_v29 = vld [vmem:[#allocation2 + $0xb4] ss:$8 sps:$4 sm:$0xff]   ;;  %v677_v30 = vld [vmem:[#allocation2 + $0xb0] ss:$8 sps:$4 sm:$0xff]   ;;  %v678_v31 = vld [vmem:[#allocation2 + $0xc4] ss:$8 sps:$4 sm:$0xff]  }
  0x30   :  { %v680_v32 = vld [vmem:[#allocation2 + $0xc0] ss:$8 sps:$4 sm:$0xff]   ;;  %v681_v33 = vld [vmem:[#allocation2 + $0xd4] ss:$8 sps:$4 sm:$0xff]   ;;  %v683_v34 = vld [vmem:[#allocation2 + $0xd0] ss:$8 sps:$4 sm:$0xff]  }
  0x31   :  { %v684_v35 = vld [vmem:[#allocation2 + $0xe4] ss:$8 sps:$4 sm:$0xff]   ;;  %v686_v36 = vld [vmem:[#allocation2 + $0xe0] ss:$8 sps:$4 sm:$0xff]   ;;  %v687_v37 = vld [vmem:[#allocation2 + $0xf4] ss:$8 sps:$4 sm:$0xff]  }
  0x32   :  { %337 = vmatpush1.bf16.msra.mxu1 %v650_v12  ;;  %v689_v38 = vld [vmem:[#allocation2 + $0xf0] ss:$8 sps:$4 sm:$0xff]   ;;  %v690_v39 = vld [vmem:[#allocation4 + $0x40] sm:$0xff]   ;;  %v692_v41 = vld [vmem:[#allocation4 + $0x48] sm:$0xff]   ;;  %v59_v52 = vshrl.u32 %v58_v51, 7 }
  0x33   :  { %338 = vmatprep.subr.bf16.mxu1 %v651_v13  ;;  %v691_v40 = vld [vmem:[#allocation4] sm:$0xff]   ;;  %611 = vmatprep.subr.bf16.mxu0 %v690_v39  ;;  %v693_v42 = vld [vmem:[#allocation4 + $0x8] sm:$0xff]   ;;  %v695_v44 = vld [vmem:[#allocation4 + $0x10] sm:$0xff]  }
  0x34   :  { %612 = vmatpush3.bf16.msra.mxu0 %v691_v40  ;;  %v696_v45 = vld [vmem:[#allocation4 + $0x58] sm:$0xff]   ;;  %v698_v47 = vld [vmem:[#allocation4 + $0x60] sm:$0xff]   ;;  %v700_v49 = vld [vmem:[#allocation4 + $0x68] sm:$0xff]   ;;  %v60_v53 = vsub.s32 0, %v59_v52  ;;  %v64_v55 = vsub.s32 1, %v59_v52 }
  0x35   :  { %613 = vmatprep.subr.bf16.mxu0 %v692_v41  ;;  %v697_v46 = vld [vmem:[#allocation4 + $0x18] sm:$0xff]   ;;  %v699_v48 = vld [vmem:[#allocation4 + $0x20] sm:$0xff]   ;;  %v701_v50 = vld [vmem:[#allocation4 + $0x28] sm:$0xff]  }
  0x36   :  { %339 = vmatpush1.bf16.msra.mxu1 %v653_v14  ;;  %v51_v54 = vld [vmem:[%s842_s4] ss:$8 sm:$0x3]  ;;  %v702_v4 = vld [vmem:[#allocation4 + $0x70] sm:$0xff]   ;;  %v704_v6 = vld [vmem:[#allocation4 + $0x78] sm:$0xff]  }
  0x37   :  { %340 = vmatprep.subr.bf16.mxu1 %v654_v15  ;;  %v61_v56 = vrot.slane %v51_v54, %v60_v53  ;;  %v65_v57 = vrot.slane %v51_v54, %v64_v55  ;;  %v703_v5 = vld [vmem:[#allocation4 + $0x30] sm:$0xff]   ;;  %v705_v7 = vld [vmem:[#allocation4 + $0x38] sm:$0xff]   ;;  %v558_v8 = vld [vmem:[%s842_s4 + $0x1] ss:$8 sm:$0x3] }
  0x38   :  { %614 = vmatpush3.bf16.msra.mxu0 %v693_v42  ;;  %v165_v9 = vrot.slane %v558_v8, %v60_v53  ;;  %v169_v10 = vrot.slane %v558_v8, %v64_v55 }
  0x39   :  { %615 = vmatprep.subr.bf16.mxu0 %v694_v43 }
  0x3a   :  { %341 = vmatpush1.bf16.msra.mxu1 %v656_v16 }
  0x3b   :  { %342 = vmatprep.subr.bf16.mxu1 %v657_v17 }
  0x3c   :  { %616 = vmatpush3.bf16.msra.mxu0 %v695_v44 }
  0x3d   :  { %617 = vmatprep.subr.bf16.mxu0 %v696_v45 }
  0x3e   :  { %343 = vmatpush1.bf16.msra.mxu1 %v659_v18 }
  0x3f   :  { %344 = vmatprep.subr.bf16.mxu1 %v660_v19 }
  0x40   :  { %618 = vmatpush3.bf16.msra.mxu0 %v697_v46 }
  0x41   :  { %619 = vmatprep.subr.bf16.mxu0 %v698_v47 }
  0x42   :  { %345 = vmatpush1.bf16.msra.mxu1 %v662_v20 }
  0x43   :  { %346 = vmatprep.subr.bf16.mxu1 %v663_v21 }
  0x44   :  { %620 = vmatpush3.bf16.msra.mxu0 %v699_v48 }
  0x45   :  { %621 = vmatprep.subr.bf16.mxu0 %v700_v49 }
  0x46   :  { %347 = vmatpush1.bf16.msra.mxu1 %v665_v22  ;;  %v54_v22 = vld [vmem:[%s842_s4 + $0x2] ss:$0 sm:$0xff] }
  0x47   :  { %348 = vmatprep.subr.bf16.mxu1 %v666_v23 }
  0x48   :  { %622 = vmatpush3.bf16.msra.mxu0 %v701_v50 }
  0x49   :  { %623 = vmatprep.subr.bf16.mxu0 %v702_v4 }
  0x4a   :  { %349 = vmatpush1.bf16.msra.mxu1 %v668_v24 }
  0x4b   :  { %350 = vmatprep.subr.bf16.mxu1 %v669_v25 }
  0x4c   :  { %624 = vmatpush3.bf16.msra.mxu0 %v703_v5 }
  0x4d   :  { %625 = vmatprep.subr.bf16.mxu0 %v704_v6 }
  0x4e   :  { %351 = vmatpush1.bf16.msra.mxu1 %v671_v26 }
  0x4f   :  { %352 = vmatprep.subr.bf16.mxu1 %v672_v27 }
  0x50   :  { %626 = vmatpush3.bf16.msra.mxu0 %v705_v7 }
  0x52   :  { %353 = vmatpush1.bf16.msra.mxu1 %v674_v28 }
  0x53   :  { %354 = vmatprep.subr.bf16.mxu1 %v675_v29  ;;  %v55_v29 = vld [vmem:[%s842_s4 + $0x3] ss:$0 sm:$0xff] }
  0x54   :  { %vm545_vm2 = vcmp.gt.f32.partialorder %v55_v29, 0.5 }
  0x56   :  { %355 = vmatpush1.bf16.msra.mxu1 %v677_v30 }
  0x57   :  { %356 = vmatprep.subr.bf16.mxu1 %v678_v31 }
  0x5a   :  { %357 = vmatpush1.bf16.msra.mxu1 %v680_v32 }
  0x5b   :  { %358 = vmatprep.subr.bf16.mxu1 %v681_v33 }
  0x5e   :  { %359 = vmatpush1.bf16.msra.mxu1 %v683_v34 }
  0x5f   :  { %360 = vmatprep.subr.bf16.mxu1 %v684_v35 }
  0x62   :  { %361 = vmatpush1.bf16.msra.mxu1 %v686_v36 }
  0x63   :  { %362 = vmatprep.subr.bf16.mxu1 %v687_v37 }
  0x66   :  { %363 = vmatpush1.bf16.msra.mxu1 %v689_v38 }
 0x100   :  { %v118_v58 = vpop.f32.mrb[0].mxu0 }
 0x101   :  { %v119_v59 = vadd.f32 %v118_v58, %v61_v56  ;;  %v120_v60 = vpop.f32.mrb[1].mxu0 }
 0x102   :  { %v121_v61 = vadd.f32 %v120_v60, %v65_v57  ;;  %v122_v62 = vpop.f32.mrb[2].mxu0 }
 0x103   :  { %v125_v63 = vmax.f32 %v119_v59, 0.0  ;;  %v123_v0 = vpop.f32.mrb[3].mxu0 }
 0x104   :  { %v126_v1 = vmax.f32 %v121_v61, 0.0 }
 0x105   :  { %v127_v3 = vpack.c.bf16 %v125_v63, %v125_v63 }
 0x106   :  { %v128_v2 = vpack.c.bf16 %v126_v1, %v126_v1 }
 0x108   :  { %364 = vmatprep.mubr.bf16.mxu1 %v128_v2 }
 0x109   :  { %365 = vmatmul.mubr.bf16.vlgmr.msra.gmra.mrb[0].mxu1 %v127_v3 }
 0x1dc   :  { %v366_v11 = vpop.f32.mrb[0].mxu1 }
 0x1dd   :  { %v367_v12 = vadd.f32 %v366_v11, %v165_v9  ;;  %v368_v13 = vpop.f32.mrb[1].mxu1 }
 0x1de   :  { %v369_v14 = vadd.f32 %v368_v13, %v169_v10  ;;  %v370_v15 = vpop.f32.mrb[2].mxu1 }
 0x1df   :  { %v373_v16 = vmax.f32 %v367_v12, 0.0  ;;  %v371_v17 = vpop.f32.mrb[3].mxu1 }
 0x1e0   :  { %v374_v18 = vmax.f32 %v369_v14, 0.0 }
 0x1e1   :  { %v375_v20 = vpack.c.bf16 %v373_v16, %v373_v16 }
 0x1e2   :  { %v376_v19 = vpack.c.bf16 %v374_v18, %v374_v18 }
 0x1e4   :  { %537 = vmatprep.mubr.bf16.mxu0 %v376_v19 }
 0x1e5   :  { %538 = vmatmul.mubr.bf16.vlgmr.msra.gmra.mrb[4].mxu0 %v375_v20 }
 0x2b8   :  { %v627_v21 = vpop.f32.mrb[4].mxu0 }
 0x2b9   :  { %v628_v23 = vpop.f32.mrb[5].mxu0 }
 0x2ba   :  { %v629_v24 = vadd.f32 %v628_v23, %v627_v21  ;;  %v630_v25 = vpop.f32.mrb[6].mxu0 }
 0x2bb   :  { %v631_v26 = vpop.f32.mrb[7].mxu0 }
 0x2bc   :  { %v540_v27 = vadd.f32 %v629_v24, %v54_v22 }
 0x2be   :  { %v546_v28 = vmul.f32 1.442695, %v540_v27 }
 0x2c0   :  { %706 = vpow2.f32 %v546_v28 }
 0x2ca   :  { %v707_v30 = vpop.eup %706 }
 0x2cb   :  { %v550_v31 = vsel %vm545_vm2, %v707_v30, %v540_v27 }
 0x2cc   :  { %551 = vst [vmem:[%s843_s5] sm:$0xff] %v550_v31 }
 0x2cd   :  { %556 = vsyncpa [#allocation3], 1 }
 0x2ce   :  { %557 = vsyncpa [#allocation5], 1 }

</bundles_post_ra>
